<compile_context>
chip_gen: v7x
topology: tpu7x:2x2x1
jax: 0.10.0
libtpu: 0.0.40
codegen_flags: <defaults>
</compile_context>

<pallas_src>
import functools

import jax
import jax.numpy as jnp
from jax.experimental import pallas as pl
from jax.experimental.pallas import tpu as pltpu

_LANE = 128    # lane granule (last dim)
_SUBLANE = 8   # sublane granule (second-to-last dim)


def _round_up(n, m):
    return ((n + m - 1) // m) * m


def policy_net_kernel(x_ref, w1_ref, b1_ref, w2_ref, b2_ref, w3_ref, b3_ref,
                      out_ref):
    """Fused fc1 -> ReLU -> fc2 -> ReLU -> fc3 -> softmax for one batch tile."""
    bf16 = jnp.bfloat16
    x = x_ref[...].astype(bf16)                     # (TB, IN_PAD)

    # fc1 + ReLU  (bf16 MXU inputs, f32 accumulation; bias/ReLU in f32)
    h1 = jnp.dot(x, w1_ref[...], preferred_element_type=jnp.float32)
    h1 = jnp.maximum(h1 + b1_ref[...], 0.0)

    # fc2 + ReLU
    h2 = jnp.dot(h1.astype(bf16), w2_ref[...], preferred_element_type=jnp.float32)
    h2 = jnp.maximum(h2 + b2_ref[...], 0.0)

    # fc3: padded output lanes carry -1e30 baked into the bias, so exp()
    # underflows to exactly 0 there and they get zero probability.
    logits = jnp.dot(h2.astype(bf16), w3_ref[...], preferred_element_type=jnp.float32)
    logits = logits + b3_ref[...]

    # Numerically stable softmax over the lane axis (exact division so every
    # row sums to 1 within f32 rounding).
    m = jnp.max(logits, axis=-1, keepdims=True)
    e = jnp.exp(logits - m)
    denom = jnp.sum(e, axis=-1, keepdims=True)
    out_ref[...] = e / denom


def prepare_params(params, input_size, hidden_size, output_size):
    """One-time padding of weights/biases to lane-dense, MXU-friendly layouts.

    Weights -> bfloat16 (halves resident VMEM + DMA bytes, full-rate MXU).
    Biases  -> float32; padded fc3 bias lanes are -1e30 (softmax mask baked in).
    """
    w1, b1, w2, b2, w3, b3 = params
    in_p = _round_up(input_size, _LANE)
    hid_p = _round_up(hidden_size, _LANE)
    out_p = _round_up(output_size, _LANE)
    bf16, f32 = jnp.bfloat16, jnp.float32

    w1p = jnp.zeros((in_p, hid_p), bf16).at[:input_size, :hidden_size].set(w1.astype(bf16))
    b1p = jnp.zeros((1, hid_p), f32).at[:, :hidden_size].set(b1)
    w2p = jnp.zeros((hid_p, hid_p), bf16).at[:hidden_size, :hidden_size].set(w2.astype(bf16))
    b2p = jnp.zeros((1, hid_p), f32).at[:, :hidden_size].set(b2)
    w3p = jnp.zeros((hid_p, out_p), bf16).at[:hidden_size, :output_size].set(w3.astype(bf16))
    b3p = jnp.full((1, out_p), -1e30, f32).at[:, :output_size].set(b3)
    return (w1p, b1p, w2p, b2p, w3p, b3p)


@functools.partial(jax.jit, static_argnames=("output_size",))
def policy_net_forward(x, padded_params, *, output_size):
    """Pads x, runs the fused kernel over a batch grid, slices the real block."""
    w1p, b1p, w2p, b2p, w3p, b3p = padded_params
    batch, in_size = x.shape
    in_p, hid_p = w1p.shape
    out_p = w3p.shape[1]

    # Batch tile: sublane-aligned, up to 512 rows per grid step.  For large
    # batches use an even number of roughly equal tiles so the "parallel" grid
    # axis gives both v7x TensorCores work.
    batch_sub = _round_up(batch, _SUBLANE)
    if batch_sub <= 512:
        tb = batch_sub
    else:
        n_tiles = 2 * pl.cdiv(batch_sub, 1024)
        tb = _round_up(pl.cdiv(batch_sub, n_tiles), _SUBLANE)
    batch_p = _round_up(batch, tb)

    xp = jnp.zeros((batch_p, in_p), jnp.float32).at[:batch, :in_size].set(
        x.astype(jnp.float32))

    vmem = pltpu.MemorySpace.VMEM
    # Constant index_map -> weights/biases stay VMEM-resident across batch tiles.
    resident = lambda shape: pl.BlockSpec(
        shape, lambda i: (0,) * len(shape), memory_space=vmem)

    out_padded = pl.pallas_call(
        policy_net_kernel,
        out_shape=jax.ShapeDtypeStruct((batch_p, out_p), jnp.float32),
        grid=(batch_p // tb,),
        in_specs=[
            pl.BlockSpec((tb, in_p), lambda i: (i, 0), memory_space=vmem),
            resident((in_p, hid_p)), resident((1, hid_p)),
            resident((hid_p, hid_p)), resident((1, hid_p)),
            resident((hid_p, out_p)), resident((1, out_p)),
        ],
        out_specs=pl.BlockSpec((tb, out_p), lambda i: (i, 0),
                               memory_space=vmem),
        compiler_params=pltpu.CompilerParams(
            dimension_semantics=("parallel",)),
    )(xp, w1p, b1p, w2p, b2p, w3p, b3p)

    return out_padded[:batch, :output_size]


def init_params(key, input_size, hidden_size, output_size):
    """Deterministic init matching nn.Linear's U(-1/sqrt(fan_in), 1/sqrt(fan_in)).

    Weights are stored transposed relative to PyTorch ([in, out] instead of
    [out, in]) so the kernel computes x @ W directly; biases are [1, out] rows.
    """
    ks = jax.random.split(key, 6)

    def linear(kw, kb, fan_in, fan_out):
        bound = 1.0 / jnp.sqrt(jnp.float32(fan_in))
        w = jax.random.uniform(kw, (fan_in, fan_out), jnp.float32, -bound, bound)
        b = jax.random.uniform(kb, (1, fan_out), jnp.float32, -bound, bound)
        return w, b

    w1, b1 = linear(ks[0], ks[1], input_size, hidden_size)
    w2, b2 = linear(ks[2], ks[3], hidden_size, hidden_size)
    w3, b3 = linear(ks[4], ks[5], hidden_size, output_size)
    return (w1, b1, w2, b2, w3, b3)


if __name__ == "__main__":
    input_size, hidden_size, output_size = 16, 32, 8
    batch = 2

    key = jax.random.PRNGKey(0)
    k_params, k_x = jax.random.split(key)

    params = init_params(k_params, input_size, hidden_size, output_size)
    padded_params = prepare_params(params, input_size, hidden_size, output_size)
    x = jax.random.normal(k_x, (batch, input_size), dtype=jnp.float32)

    out = policy_net_forward(x, padded_params, output_size=output_size)
    out = jax.block_until_ready(out)

    # References (unpadded): bf16-matched (same matmul dtypes as the kernel)
    # and plain f32 (original PyTorch semantics).
    w1, b1, w2, b2, w3, b3 = params
    bf16 = jnp.bfloat16

    def mm(a, w):
        return jnp.dot(a.astype(bf16), w.astype(bf16),
                       preferred_element_type=jnp.float32)

    h = jnp.maximum(mm(x, w1) + b1, 0.0)
    h = jnp.maximum(mm(h, w2) + b2, 0.0)
    ref_bf16 = jax.nn.softmax(mm(h, w3) + b3, axis=-1)

    h = jnp.maximum(x @ w1 + b1, 0.0)
    h = jnp.maximum(h @ w2 + b2, 0.0)
    ref_f32 = jax.nn.softmax(h @ w3 + b3, axis=-1)

    assert out.shape == (batch, output_size)
    # Exact-division softmax -> rows sum to 1 within f32 rounding.
    assert jnp.allclose(jnp.sum(out, axis=-1), 1.0, atol=1e-4)
    # Tight check against the bf16-matmul reference.
    assert jnp.allclose(out, ref_bf16, atol=1e-3, rtol=1e-3)
    # Loose check against the full-f32 reference (bf16 MXU inputs).
    assert jnp.allclose(out, ref_f32, atol=1e-2, rtol=1e-2)

    print("KERNEL_OK")
</pallas_src>

<mosaic_0001>
module attributes {stable_mosaic.version = 11 : i64} {
  func.func @policy_net_kernel(%arg0: i32, %arg1: memref<8x128xf32, #tpu.memory_space<vmem>>, %arg2: memref<128x128xbf16, #tpu.memory_space<vmem>>, %arg3: memref<1x128xf32, #tpu.memory_space<vmem>>, %arg4: memref<128x128xbf16, #tpu.memory_space<vmem>>, %arg5: memref<1x128xf32, #tpu.memory_space<vmem>>, %arg6: memref<128x128xbf16, #tpu.memory_space<vmem>>, %arg7: memref<1x128xf32, #tpu.memory_space<vmem>>, %arg8: memref<8x128xf32, #tpu.memory_space<vmem>>) attributes {dimension_semantics = [#tpu.dimension_semantics<parallel>], iteration_bounds = array<i64: 1>, scalar_prefetch = 0 : i64, scratch_operands = 0 : i64, tpu.core_type = #tpu.core_type<tc>, window_params = [{transform_indices = @transform_0, window_bounds = array<i64: 8, 128>}, {pipeline_mode = #tpu.pipeline_mode<synchronous>, transform_indices = @transform_1, window_bounds = array<i64: 128, 128>}, {pipeline_mode = #tpu.pipeline_mode<synchronous>, transform_indices = @transform_2, window_bounds = array<i64: 1, 128>}, {pipeline_mode = #tpu.pipeline_mode<synchronous>, transform_indices = @transform_3, window_bounds = array<i64: 128, 128>}, {pipeline_mode = #tpu.pipeline_mode<synchronous>, transform_indices = @transform_4, window_bounds = array<i64: 1, 128>}, {pipeline_mode = #tpu.pipeline_mode<synchronous>, transform_indices = @transform_5, window_bounds = array<i64: 128, 128>}, {pipeline_mode = #tpu.pipeline_mode<synchronous>, transform_indices = @transform_6, window_bounds = array<i64: 1, 128>}, {transform_indices = @transform_7, window_bounds = array<i64: 8, 128>}]} {
    %c0 = arith.constant 0 : index
    %c0_0 = arith.constant 0 : index
    %0 = vector.load %arg1[%c0, %c0_0] : memref<8x128xf32, #tpu.memory_space<vmem>>, vector<8x128xf32>
    %1 = arith.truncf %0 : vector<8x128xf32> to vector<8x128xbf16>
    %c0_1 = arith.constant 0 : index
    %c0_2 = arith.constant 0 : index
    %2 = vector.load %arg2[%c0_1, %c0_2] : memref<128x128xbf16, #tpu.memory_space<vmem>>, vector<128x128xbf16>
    %cst = arith.constant dense<0.000000e+00> : vector<8x128xf32>
    %3 = tpu.matmul %1, %2, %cst {dimension_numbers = #tpu.dot_dimension_numbers<[1], [0], [0], [1], [0, 0, 1, 1], [], []>} : vector<8x128xbf16>, vector<128x128xbf16>, vector<8x128xf32> -> vector<8x128xf32>
    %c0_3 = arith.constant 0 : index
    %c0_4 = arith.constant 0 : index
    %4 = vector.load %arg3[%c0_3, %c0_4] : memref<1x128xf32, #tpu.memory_space<vmem>>, vector<1x128xf32>
    %5 = vector.broadcast %4 : vector<1x128xf32> to vector<8x128xf32>
    %6 = arith.addf %3, %5 : vector<8x128xf32>
    %cst_5 = arith.constant 0.000000e+00 : f32
    %7 = vector.broadcast %cst_5 : f32 to vector<8x128xf32>
    %8 = arith.maximumf %6, %7 : vector<8x128xf32>
    %9 = arith.truncf %8 : vector<8x128xf32> to vector<8x128xbf16>
    %c0_6 = arith.constant 0 : index
    %c0_7 = arith.constant 0 : index
    %10 = vector.load %arg4[%c0_6, %c0_7] : memref<128x128xbf16, #tpu.memory_space<vmem>>, vector<128x128xbf16>
    %cst_8 = arith.constant dense<0.000000e+00> : vector<8x128xf32>
    %11 = tpu.matmul %9, %10, %cst_8 {dimension_numbers = #tpu.dot_dimension_numbers<[1], [0], [0], [1], [0, 0, 1, 1], [], []>} : vector<8x128xbf16>, vector<128x128xbf16>, vector<8x128xf32> -> vector<8x128xf32>
    %c0_9 = arith.constant 0 : index
    %c0_10 = arith.constant 0 : index
    %12 = vector.load %arg5[%c0_9, %c0_10] : memref<1x128xf32, #tpu.memory_space<vmem>>, vector<1x128xf32>
    %13 = vector.broadcast %12 : vector<1x128xf32> to vector<8x128xf32>
    %14 = arith.addf %11, %13 : vector<8x128xf32>
    %cst_11 = arith.constant 0.000000e+00 : f32
    %15 = vector.broadcast %cst_11 : f32 to vector<8x128xf32>
    %16 = arith.maximumf %14, %15 : vector<8x128xf32>
    %17 = arith.truncf %16 : vector<8x128xf32> to vector<8x128xbf16>
    %c0_12 = arith.constant 0 : index
    %c0_13 = arith.constant 0 : index
    %18 = vector.load %arg6[%c0_12, %c0_13] : memref<128x128xbf16, #tpu.memory_space<vmem>>, vector<128x128xbf16>
    %cst_14 = arith.constant dense<0.000000e+00> : vector<8x128xf32>
    %19 = tpu.matmul %17, %18, %cst_14 {dimension_numbers = #tpu.dot_dimension_numbers<[1], [0], [0], [1], [0, 0, 1, 1], [], []>} : vector<8x128xbf16>, vector<128x128xbf16>, vector<8x128xf32> -> vector<8x128xf32>
    %c0_15 = arith.constant 0 : index
    %c0_16 = arith.constant 0 : index
    %20 = vector.load %arg7[%c0_15, %c0_16] : memref<1x128xf32, #tpu.memory_space<vmem>>, vector<1x128xf32>
    %21 = vector.broadcast %20 : vector<1x128xf32> to vector<8x128xf32>
    %22 = arith.addf %19, %21 : vector<8x128xf32>
    %cst_17 = arith.constant dense<0xFF800000> : vector<8xf32>
    %23 = vector.multi_reduction <maximumf>, %22, %cst_17 [1] : vector<8x128xf32> to vector<8xf32>
    %24 = vector.shape_cast %23 : vector<8xf32> to vector<8x1xf32>
    %25 = vector.broadcast %24 : vector<8x1xf32> to vector<8x128xf32>
    %26 = arith.subf %22, %25 : vector<8x128xf32>
    %27 = math.exp %26 : vector<8x128xf32>
    %cst_18 = arith.constant dense<0.000000e+00> : vector<8xf32>
    %28 = vector.multi_reduction <add>, %27, %cst_18 [1] : vector<8x128xf32> to vector<8xf32>
    %29 = vector.shape_cast %28 : vector<8xf32> to vector<8x1xf32>
    %30 = vector.broadcast %29 : vector<8x1xf32> to vector<8x128xf32>
    %31 = arith.divf %27, %30 : vector<8x128xf32>
    %c0_19 = arith.constant 0 : index
    %c0_20 = arith.constant 0 : index
    %32 = vector.load %arg8[%c0_19, %c0_20] : memref<8x128xf32, #tpu.memory_space<vmem>>, vector<8x128xf32>
    tpu.vector_store %arg8[%c0_19, %c0_20], %31 {strides = array<i32>} : memref<8x128xf32, #tpu.memory_space<vmem>>, vector<8x128xf32>,
    return
  }
  func.func @transform_0(%arg0: i32) -> (i32, i32) {
    %c0_i32 = arith.constant 0 : i32
    %c0_i32_0 = arith.constant 0 : i32
    return %arg0, %c0_i32 : i32, i32
  }
  func.func @transform_1(%arg0: i32) -> (i32, i32) {
    %c0_i32 = arith.constant 0 : i32
    %c0_i32_0 = arith.constant 0 : i32
    %c0_i32_1 = arith.constant 0 : i32
    return %c0_i32, %c0_i32_0 : i32, i32
  }
  func.func @transform_2(%arg0: i32) -> (i32, i32) {
    %c0_i32 = arith.constant 0 : i32
    %c0_i32_0 = arith.constant 0 : i32
    %c0_i32_1 = arith.constant 0 : i32
    return %c0_i32, %c0_i32_0 : i32, i32
  }
  func.func @transform_3(%arg0: i32) -> (i32, i32) {
    %c0_i32 = arith.constant 0 : i32
    %c0_i32_0 = arith.constant 0 : i32
    %c0_i32_1 = arith.constant 0 : i32
    return %c0_i32, %c0_i32_0 : i32, i32
  }
  func.func @transform_4(%arg0: i32) -> (i32, i32) {
    %c0_i32 = arith.constant 0 : i32
    %c0_i32_0 = arith.constant 0 : i32
    %c0_i32_1 = arith.constant 0 : i32
    return %c0_i32, %c0_i32_0 : i32, i32
  }
  func.func @transform_5(%arg0: i32) -> (i32, i32) {
    %c0_i32 = arith.constant 0 : i32
    %c0_i32_0 = arith.constant 0 : i32
    %c0_i32_1 = arith.constant 0 : i32
    return %c0_i32, %c0_i32_0 : i32, i32
  }
  func.func @transform_6(%arg0: i32) -> (i32, i32) {
    %c0_i32 = arith.constant 0 : i32
    %c0_i32_0 = arith.constant 0 : i32
    %c0_i32_1 = arith.constant 0 : i32
    return %c0_i32, %c0_i32_0 : i32, i32
  }
  func.func @transform_7(%arg0: i32) -> (i32, i32) {
    %c0_i32 = arith.constant 0 : i32
    %c0_i32_0 = arith.constant 0 : i32
    return %arg0, %c0_i32 : i32, i32
  }
}

</mosaic_0001>

<bundles_post_ra>
// kernel: policy_net_forward.1
= control target key start
LH: loop header
LB: loop body
LE: loop exit
PB: predicated region body
PF: predicated region fallthrough
CT: control target
= control target key end

     0   :  { %12 = vsyncpa [#allocation3], 0  ;;  %s786_s0 = inlined_call_operand.vmem [shape: f32[8,128], index: 0, kind: input, shape index: {}]   ;;  %s787_s1 = inlined_call_operand.hbm [shape: bf16[128,128], index: 1, kind: input, shape index: {}]   ;;  %s788_s2 = inlined_call_operand.vmem [shape: f32[1,128], index: 2, kind: input, shape index: {}]   ;;  %s789_s3 = inlined_call_operand.hbm [shape: bf16[128,128], index: 3, kind: input, shape index: {}]   ;;  %s790_s4 = inlined_call_operand.vmem [shape: f32[1,128], index: 4, kind: input, shape index: {}]   ;;  %s791_s5 = inlined_call_operand.hbm [shape: bf16[128,128], index: 5, kind: input, shape index: {}]   ;;  %s792_s6 = inlined_call_operand.vmem [shape: f32[1,128], index: 6, kind: input, shape index: {}]   ;;  %s793_s7 = inlined_call_operand.vmem [shape: f32[8,128], index: 7, kind: output, shape index: {}]  }
   0x1   :  { %13 = vsyncpa [#allocation5], 0  ;;  %s642_s24 = smov [#allocation4]   ;;  %s643_s26 = smov [#allocation2]  }
   0x2   :  { %s35_s25 = sshll.u32 %s642_s24, 4  ;;  %s21_s27 = sshll.u32 %s643_s26, 4  ;;  %s36_s25 = int_to_ptr.vmem [resolvable:$true] %s35_s25  ;;  %s689_s27 = int_to_ptr.vmem [resolvable:$true] %s21_s27 }
   0x3   :  { %s572_s30 = scalar_lea.hbm %s789_s3, 1024 }
   0x4   :  { %p573_p0 = scmp.ne.s32.totalorder %s789_s3, %s572_s30  ;;  %p576_p1 = scmp.lt.u32.totalorder %s572_s30, %s789_s3 }
   0x6   :  { %p578_p2 = pnand %p576_p1, %p573_p0 }
   0x8   :  { %581 = shalt.err (!%p578_p2)
}
   0x9   :  { %s582_s12 = scalar_lea.vmem %s36_s25, 1024  ;;  %p587_p4 = scmp.lt.s32.totalorder %s36_s25, %s36_s25 }
   0xa   :  { %p583_p3 = scmp.ne.s32.totalorder %s36_s25, %s582_s12  ;;  %p588_p5 = scmp.lt.s32.totalorder %s582_s12, %s582_s12 }
   0xc   :  { %p589_p6 = por %p588_p5, %p587_p4 }
   0xe   :  { %p590_p7 = pnand %p589_p6, %p583_p3 }
  0x10   :  { %593 = shalt.err (!%p590_p7)
}
  0x11   :  { %s644_s13 = smov 64   ;;  %s645_s14 = smov 4  }
  0x12   :  { %41 = dma.hbm_to_vmem [thread:$0]  %s789_s3, 1024, %s36_s25, [#allocation5], %s644_s13, %s644_s13, %s645_s14  }
  0x13   :  { %s594_s19 = scalar_lea.hbm %s787_s1, 1024 }
  0x14   :  { %p595_p8 = scmp.ne.s32.totalorder %s787_s1, %s594_s19  ;;  %p598_p9 = scmp.lt.u32.totalorder %s594_s19, %s787_s1 }
  0x16   :  { %p600_p10 = pnand %p598_p9, %p595_p8 }
  0x18   :  { %603 = shalt.err (!%p600_p10)
}
  0x19   :  { %s604_s24 = scalar_lea.vmem %s689_s27, 1024  ;;  %p609_p12 = scmp.lt.s32.totalorder %s689_s27, %s689_s27 }
  0x1a   :  { %p605_p11 = scmp.ne.s32.totalorder %s689_s27, %s604_s24  ;;  %p610_p13 = scmp.lt.s32.totalorder %s604_s24, %s604_s24 }
  0x1c   :  { %p611_p0 = por %p610_p13, %p609_p12 }
  0x1e   :  { %p612_p1 = pnand %p611_p0, %p605_p11 }
  0x20   :  { %615 = shalt.err (!%p612_p1)
}
  0x21   :  { %27 = dma.hbm_to_vmem [thread:$0]  %s787_s1, 1024, %s689_s27, [#allocation3], %s644_s13, %s644_s13, %s645_s14  }
  0x22   :  { %s646_s26 = smov [#allocation6]   ;;  %s616_s8 = scalar_lea.hbm %s791_s5, 1024 }
  0x23   :  { %s49_s28 = sshll.u32 %s646_s26, 4  ;;  %p617_p2 = scmp.ne.s32.totalorder %s791_s5, %s616_s8  ;;  %s50_s28 = int_to_ptr.vmem [resolvable:$true] %s49_s28 }
  0x24   :  { %p620_p3 = scmp.lt.u32.totalorder %s616_s8, %s791_s5 }
  0x26   :  { %p622_p4 = pnand %p620_p3, %p617_p2 }
  0x28   :  { %625 = shalt.err (!%p622_p4)
}
  0x29   :  { %s626_s15 = scalar_lea.vmem %s50_s28, 1024  ;;  %p631_p6 = scmp.lt.s32.totalorder %s50_s28, %s50_s28 }
  0x2a   :  { %p627_p5 = scmp.ne.s32.totalorder %s50_s28, %s626_s15  ;;  %p632_p7 = scmp.lt.s32.totalorder %s626_s15, %s626_s15 }
  0x2c   :  { %p633_p8 = por %p632_p7, %p631_p6 }
  0x2e   :  { %p634_p9 = pnand %p633_p8, %p627_p5 }
  0x30   :  { %637 = shalt.err (!%p634_p9)
}
  0x31   :  { %55 = dma.hbm_to_vmem [thread:$0]  %s791_s5, 1024, %s50_s28, [#allocation5], %s644_s13, %s644_s13, %s645_s14  }
  0x32   :  { %638 = dma.done.wait [#allocation3], 1024  }
  0x33   :  { %639 = vsyncadd [#allocation3], 4294966272 }
  0x34   :  { %640 = dma.done.wait [#allocation5], 2048  }
  0x35   :  { %641 = vsyncadd [#allocation5], 4294965248  ;;  %v647_v0 = vmov 0.0   ;;  %vm648_vm0 = vmmov 0   ;;  %v544_v1 = vld [vmem:[#allocation2] sm:$0xff]   ;;  %v545_v2 = vld [vmem:[#allocation2 + $0x8] sm:$0xff]  }
  0x36   :  { %477 = vmatprep.subr.bf16.mxu0 %v647_v0  ;;  %493 = vmatprep.mubr.msk.bf16.mxu0 %vm648_vm0, %v647_v0  ;;  %v546_v3 = vld [vmem:[#allocation2 + $0x10] sm:$0xff]   ;;  %v552_v4 = vld [vmem:[#allocation4] sm:$0xff]   ;;  %v547_v5 = vld [vmem:[#allocation2 + $0x18] sm:$0xff]  }
  0x37   :  { %497 = vmatprep.subr.bf16.mxu1 %v647_v0  ;;  %513 = vmatprep.mubr.msk.bf16.mxu1 %vm648_vm0, %v647_v0  ;;  %v553_v6 = vld [vmem:[#allocation4 + $0x8] sm:$0xff]   ;;  %v548_v7 = vld [vmem:[#allocation2 + $0x20] sm:$0xff]   ;;  %v554_v8 = vld [vmem:[#allocation4 + $0x10] sm:$0xff]  }
  0x38   :  { %478 = vmatpush3.bf16.msra.mxu0 %v544_v1  ;;  %498 = vmatpush3.bf16.msra.mxu1 %v552_v4  ;;  %v549_v9 = vld [vmem:[#allocation2 + $0x28] sm:$0xff]   ;;  %v555_v10 = vld [vmem:[#allocation4 + $0x18] sm:$0xff]   ;;  %v550_v11 = vld [vmem:[#allocation2 + $0x30] sm:$0xff]  }
  0x39   :  { %479 = vmatprep.subr.bf16.mxu0 %v647_v0  ;;  %499 = vmatprep.subr.bf16.mxu1 %v647_v0  ;;  %v556_v12 = vld [vmem:[#allocation4 + $0x20] sm:$0xff]   ;;  %v551_v13 = vld [vmem:[#allocation2 + $0x38] sm:$0xff]   ;;  %v557_v15 = vld [vmem:[#allocation4 + $0x28] sm:$0xff]  }
  0x3a   :  { %v68_v14 = vld [vmem:[%s786_s0] sm:$0xff]  ;;  %v558_v17 = vld [vmem:[#allocation4 + $0x30] sm:$0xff]   ;;  %v559_v18 = vld [vmem:[#allocation4 + $0x38] sm:$0xff]  }
  0x3b   :  { %v69_v16 = vpack.c.bf16 %v68_v14, %v68_v14  ;;  %v560_v19 = vld [vmem:[#allocation6] sm:$0xff]   ;;  %v561_v20 = vld [vmem:[#allocation6 + $0x8] sm:$0xff]   ;;  %v562_v21 = vld [vmem:[#allocation6 + $0x10] sm:$0xff]  }
  0x3c   :  { %480 = vmatpush3.bf16.msra.mxu0 %v545_v2  ;;  %500 = vmatpush3.bf16.msra.mxu1 %v553_v6  ;;  %v563_v22 = vld [vmem:[#allocation6 + $0x18] sm:$0xff]   ;;  %v564_v23 = vld [vmem:[#allocation6 + $0x20] sm:$0xff]   ;;  %v565_v24 = vld [vmem:[#allocation6 + $0x28] sm:$0xff]  }
  0x3d   :  { %481 = vmatprep.subr.bf16.mxu0 %v647_v0  ;;  %501 = vmatprep.subr.bf16.mxu1 %v647_v0  ;;  %v423_v25 = vld [vmem:[%s788_s2] ss:$0 sm:$0xff]  ;;  %v566_v33 = vld [vmem:[#allocation6 + $0x30] sm:$0xff]   ;;  %v567_v34 = vld [vmem:[#allocation6 + $0x38] sm:$0xff]  }
  0x3e   :  { %v432_v35 = vld [vmem:[%s790_s4] ss:$0 sm:$0xff] }
  0x3f   :  { %v441_v43 = vld [vmem:[%s792_s6] ss:$0 sm:$0xff] }
  0x40   :  { %482 = vmatpush3.bf16.msra.mxu0 %v546_v3  ;;  %502 = vmatpush3.bf16.msra.mxu1 %v554_v8 }
  0x41   :  { %483 = vmatprep.subr.bf16.mxu0 %v647_v0  ;;  %503 = vmatprep.subr.bf16.mxu1 %v647_v0 }
  0x44   :  { %484 = vmatpush3.bf16.msra.mxu0 %v547_v5  ;;  %504 = vmatpush3.bf16.msra.mxu1 %v555_v10 }
  0x45   :  { %485 = vmatprep.subr.bf16.mxu0 %v647_v0  ;;  %505 = vmatprep.subr.bf16.mxu1 %v647_v0 }
  0x48   :  { %486 = vmatpush3.bf16.msra.mxu0 %v548_v7  ;;  %506 = vmatpush3.bf16.msra.mxu1 %v556_v12 }
  0x49   :  { %487 = vmatprep.subr.bf16.mxu0 %v647_v0  ;;  %507 = vmatprep.subr.bf16.mxu1 %v647_v0 }
  0x4c   :  { %488 = vmatpush3.bf16.msra.mxu0 %v549_v9  ;;  %508 = vmatpush3.bf16.msra.mxu1 %v557_v15 }
  0x4d   :  { %489 = vmatprep.subr.bf16.mxu0 %v647_v0  ;;  %509 = vmatprep.subr.bf16.mxu1 %v647_v0 }
  0x50   :  { %490 = vmatpush3.bf16.msra.mxu0 %v550_v11  ;;  %510 = vmatpush3.bf16.msra.mxu1 %v558_v17 }
  0x51   :  { %491 = vmatprep.subr.bf16.mxu0 %v647_v0  ;;  %511 = vmatprep.subr.bf16.mxu1 %v647_v0 }
  0x54   :  { %492 = vmatpush3.bf16.msra.mxu0 %v551_v13  ;;  %512 = vmatpush3.bf16.msra.mxu1 %v559_v18 }
  0x55   :  { %517 = vmatprep.subr.bf16.mxu0 %v647_v0 }
  0x57   :  { %494 = vmatmul.mubr.bf16.vlgmr.msra.gmra.mrb[0].mxu0 %v69_v16 }
  0x58   :  { %533 = vmatprep.mubr.msk.bf16.mxu0 %vm648_vm0, %v647_v0  ;;  %518 = vmatpush3.bf16.msra.mxu0 %v560_v19 }
  0x59   :  { %519 = vmatprep.subr.bf16.mxu0 %v647_v0 }
  0x5c   :  { %520 = vmatpush3.bf16.msra.mxu0 %v561_v20 }
  0x5d   :  { %521 = vmatprep.subr.bf16.mxu0 %v647_v0 }
  0x60   :  { %522 = vmatpush3.bf16.msra.mxu0 %v562_v21 }
  0x61   :  { %523 = vmatprep.subr.bf16.mxu0 %v647_v0 }
  0x64   :  { %524 = vmatpush3.bf16.msra.mxu0 %v563_v22 }
  0x65   :  { %525 = vmatprep.subr.bf16.mxu0 %v647_v0 }
  0x68   :  { %526 = vmatpush3.bf16.msra.mxu0 %v564_v23 }
  0x69   :  { %527 = vmatprep.subr.bf16.mxu0 %v647_v0 }
  0x6c   :  { %528 = vmatpush3.bf16.msra.mxu0 %v565_v24 }
  0x6d   :  { %529 = vmatprep.subr.bf16.mxu0 %v647_v0 }
  0x70   :  { %530 = vmatpush3.bf16.msra.mxu0 %v566_v33 }
  0x71   :  { %531 = vmatprep.subr.bf16.mxu0 %v647_v0 }
  0x74   :  { %532 = vmatpush3.bf16.msra.mxu0 %v567_v34 }
 0x12a   :  { %v175_v26 = vpop.f32.mrb[0].mxu0 }
 0x12b   :  { %v176_v27 = vadd.f32 %v423_v25, %v175_v26  ;;  %v495_v28 = vpop.f32.mrb[1].mxu0 }
 0x12c   :  { %v178_v29 = vpop.f32.mrb[2].mxu0 }
 0x12d   :  { %v181_v30 = vmax.f32 %v176_v27, 0.0  ;;  %v496_v31 = vpop.f32.mrb[3].mxu0 }
 0x12f   :  { %v182_v32 = vpack.c.bf16 %v181_v30, %v181_v30 }
 0x131   :  { %514 = vmatmul.mubr.bf16.vlgmr.msra.gmra.mrb[0].mxu1 %v182_v32 }
 0x204   :  { %v288_v36 = vpop.f32.mrb[0].mxu1 }
 0x205   :  { %v289_v37 = vadd.f32 %v432_v35, %v288_v36  ;;  %v515_v38 = vpop.f32.mrb[1].mxu1 }
 0x206   :  { %v291_v39 = vpop.f32.mrb[2].mxu1 }
 0x207   :  { %v294_v40 = vmax.f32 %v289_v37, 0.0  ;;  %v516_v41 = vpop.f32.mrb[3].mxu1 }
 0x209   :  { %v295_v42 = vpack.c.bf16 %v294_v40, %v294_v40 }
 0x20b   :  { %534 = vmatmul.mubr.bf16.vlgmr.msra.gmra.mrb[4].mxu0 %v295_v42 }
 0x2de   :  { %v401_v44 = vpop.f32.mrb[4].mxu0 }
 0x2df   :  { %v402_v45 = vadd.f32 %v441_v43, %v401_v44  ;;  %v535_v46 = vpop.f32.mrb[5].mxu0 }
 0x2e0   :  { %v404_v47 = vpop.f32.mrb[6].mxu0 }
 0x2e1   :  { %407 = vmax.xlane.f32.xlu0 %v402_v45  ;;  %v536_v48 = vpop.f32.mrb[7].mxu0 }
 0x36e   :  { %v408_v49 = vpop.xlane.xlu0 %407 }
 0x36f   :  { %v409_v50 = vsub.f32 %v402_v45, %v408_v49 }
 0x371   :  { %v410_v51 = vmul.f32 1.442695, %v409_v50 }
 0x373   :  { %568 = vpow2.f32 %v410_v51 }
 0x37d   :  { %v569_v52 = vpop.eup %568 }
 0x37e   :  { %412 = vadd.xlane.f32.xlu0 %v569_v52 }
 0x40b   :  { %v413_v53 = vpop.xlane.xlu0 %412 }
 0x40c   :  { %570 = vrcp.f32 %v413_v53 }
 0x416   :  { %v571_v54 = vpop.eup %570 }
 0x417   :  { %v415_v55 = vmul.f32 %v571_v54, %v569_v52 }
 0x419   :  { %416 = vst [vmem:[%s793_s7] sm:$0xff] %v415_v55 }
 0x41a   :  { %421 = vsyncpa [#allocation3], 1 }
 0x41b   :  { %422 = vsyncpa [#allocation5], 1 }

</bundles_post_ra>
